<compile_context>
chip_gen: v7x
topology: tpu7x:2x2x1
jax: 0.10.0
libtpu: 0.0.40
codegen_flags: <defaults>
</compile_context>

<pallas_src>
import functools

import jax
import jax.numpy as jnp
from jax.experimental import pallas as pl
from jax.experimental.pallas import tpu as pltpu

_LANES = 128      # vreg lane width
_SUBLANES = 8     # vreg sublane count (f32)


def _round_up(n, m):
    return ((n + m - 1) // m) * m


def _fused_mlp_kernel(*refs, num_hidden):
    """Entire MLP in one kernel.

    refs = (x_ref, w0_ref, b0_ref, ..., wL_ref, bL_ref, out_ref)
    Weight output dims are 128-padded (lane-dense); everything is resident in
    VMEM.  Matmul inputs use the weights' dtype (f32 or bf16); accumulation,
    bias-add and ReLU stay f32.  Hidden layers get ReLU; the final layer not.
    """
    x_ref = refs[0]
    out_ref = refs[-1]
    wb_refs = refs[1:-1]

    h = x_ref[...]                       # f32 activations
    for li in range(num_hidden + 1):
        w = wb_refs[2 * li][...]         # [IN(_p), OUT_p], f32 or bf16
        b = wb_refs[2 * li + 1][...]     # [1, OUT_p], f32
        acc = jnp.dot(h.astype(w.dtype), w,
                      preferred_element_type=jnp.float32)
        acc = acc + b                    # f32 epilogue (broadcast over rows)
        if li < num_hidden:
            acc = jnp.maximum(acc, 0.0)
        h = acc
    out_ref[...] = h.astype(out_ref.dtype)


def init_perceptron_params(key, input_size, num_layer, hidden_size):
    """Deterministic init mimicking torch.nn.Linear U[-1/sqrt(fan_in), +...].

    Returns list of (w_t, b) with w_t shape [in, out] (transposed torch weight).
    """
    assert len(hidden_size) >= num_layer, \
        'hidden_size must have at least num_layer elements'
    dims = [input_size] + list(hidden_size[:num_layer]) + [10]
    params = []
    for i in range(len(dims) - 1):
        fan_in, fan_out = dims[i], dims[i + 1]
        key, kw, kb = jax.random.split(key, 3)
        bound = 1.0 / jnp.sqrt(jnp.float32(fan_in))
        w = jax.random.uniform(kw, (fan_out, fan_in), jnp.float32, -bound, bound)
        b = jax.random.uniform(kb, (fan_out,), jnp.float32, -bound, bound)
        params.append((w.T, b))  # store transposed: [in, out]
    return params


def prepare_padded_params(params, compute_dtype=jnp.float32):
    """One-time param prep.

    * Pads only weight OUTPUT feature dims to 128 lanes (input dim of the
      first layer stays unpadded — no x lane-pad needed in the forward).
    * Pre-casts weights to `compute_dtype` (bf16 recommended on v6e/v7x) so
      the in-kernel cast only touches activations.
    * Biases stay f32 (f32 epilogue on all chips, incl. v5e).
    Padded rows/cols/bias lanes are zero, so they cannot leak into real lanes.
    """
    padded = []
    in_p = params[0][0].shape[0]          # true input dim of layer 0
    for (w_t, b) in params:
        fi, fo = w_t.shape
        fo_p = _round_up(fo, _LANES)
        w_p = (jnp.zeros((in_p, fo_p), jnp.float32)
               .at[:fi, :fo].set(w_t)
               .astype(compute_dtype))
        b_p = jnp.zeros((1, fo_p), jnp.float32).at[0, :fo].set(b)
        padded.append((w_p, b_p))
        in_p = fo_p                       # next layer's (padded) input dim
    return padded


@functools.partial(jax.jit, static_argnames=("out_features", "true_dims"))
def perceptron_forward(padded_params, x, out_features=10, true_dims=None):
    """Fused forward pass: relu(Linear) * num_hidden -> Linear(out_features).

    Jitted: the batch-pad, the single pallas_call, and the final slice compile
    into one XLA program; the compiled callable is cached across invocations.
    """
    B, IN = x.shape
    Bp = _round_up(B, _SUBLANES)
    OUTp = padded_params[-1][0].shape[1]

    # Pad only the batch (sublane) dim.  The lane dim (IN) is left as-is: a
    # full-array VMEM block is exempt from the (8,128) rule and the MXU
    # handles K=IN in a single pass.
    x_p = x if Bp == B else jnp.zeros((Bp, IN), x.dtype).at[:B, :].set(x)

    flat_inputs = [x_p]
    for (w_p, b_p) in padded_params:
        flat_inputs += [w_p, b_p]

    # Advisory cost estimate from the TRUE (unpadded) dims.
    dims = true_dims if true_dims is not None else tuple(
        [IN] + [int(w.shape[1]) for (w, _) in padded_params])
    flops = 0
    bytes_accessed = B * IN * 4 + B * out_features * 4
    for fi, fo in zip(dims[:-1], dims[1:]):
        flops += 2 * B * fi * fo
        bytes_accessed += (fi * fo + fo) * 4

    kernel = functools.partial(_fused_mlp_kernel,
                               num_hidden=len(padded_params) - 1)

    # No grid: single invocation, all operands fully resident in VMEM
    # (weights ~13-26 KB, activations a few KB — far under every chip's VMEM).
    # For batch >= ~512, switch to a 1-D grid over the batch dim
    # (batch tile 512-1024, weights' index_map returning the same block every
    # step, dimension_semantics=("parallel",)) so v7x's two TensorCores split
    # the work and the activation tiles double-buffer; budget the resident
    # footprint against v7x's 64 MiB VMEM (vs 128 MiB on v5e/v6e).
    out_p = pl.pallas_call(
        kernel,
        out_shape=jax.ShapeDtypeStruct((Bp, OUTp), x.dtype),
        in_specs=[pl.BlockSpec(memory_space=pltpu.MemorySpace.VMEM)
                  for _ in flat_inputs],
        out_specs=pl.BlockSpec(memory_space=pltpu.MemorySpace.VMEM),
        cost_estimate=pl.CostEstimate(flops=flops, transcendentals=0,
                                      bytes_accessed=bytes_accessed),
    )(*flat_inputs)

    return out_p[:B, :out_features]


def perceptron_forward_ref(params, x):
    """Pure-JAX reference identical to PerceptronNN.forward (f32)."""
    *hidden, output = params
    for (w_t, b) in hidden:
        x = jnp.maximum(x @ w_t + b, 0.0)
    w_t, b = output
    return x @ w_t + b


# TODO(synk): train_model / validate_model (Adam, CrossEntropyLoss, early
# stopping, file logging) are host-side training utilities, not part of the
# forward pass, and are not translated to Pallas.

if __name__ == "__main__":
    key = jax.random.PRNGKey(0)
    key, k_in = jax.random.split(key)

    # Small config consistent with the module:
    # input_size=64, num_layer=2, hidden_size=[32, 32], output=10
    input_size, num_layer, hidden_size = 64, 2, [32, 32]
    batch = 8

    params = init_perceptron_params(key, input_size, num_layer, hidden_size)
    x = jax.random.normal(k_in, (batch, input_size), jnp.float32)
    true_dims = (input_size, *hidden_size[:num_layer], 10)

    ref = perceptron_forward_ref(params, x)

    # --- f32 MXU-input path (v5e-friendly): tight check vs. reference ------
    pp_f32 = prepare_padded_params(params, compute_dtype=jnp.float32)
    out_f32 = perceptron_forward(pp_f32, x, out_features=10, true_dims=true_dims)
    jax.block_until_ready(out_f32)
    assert out_f32.shape == (batch, 10)
    assert jnp.allclose(out_f32, ref, atol=1e-5, rtol=1e-5)

    # --- bf16 MXU-input path (v6e/v7x native; f32 accumulate + f32 epilogue)
    pp_bf16 = prepare_padded_params(params, compute_dtype=jnp.bfloat16)
    out_bf16 = perceptron_forward(pp_bf16, x, out_features=10, true_dims=true_dims)
    jax.block_until_ready(out_bf16)
    assert out_bf16.shape == (batch, 10)
    assert jnp.allclose(out_bf16, ref, atol=5e-2, rtol=5e-2)

    print("KERNEL_OK")
</pallas_src>

<mosaic_0001>
module attributes {stable_mosaic.version = 11 : i64} {
  func.func @_fused_mlp_kernel(%arg0: memref<8x64xf32, #tpu.memory_space<vmem>>, %arg1: memref<64x128xf32, #tpu.memory_space<vmem>>, %arg2: memref<1x128xf32, #tpu.memory_space<vmem>>, %arg3: memref<128x128xf32, #tpu.memory_space<vmem>>, %arg4: memref<1x128xf32, #tpu.memory_space<vmem>>, %arg5: memref<128x128xf32, #tpu.memory_space<vmem>>, %arg6: memref<1x128xf32, #tpu.memory_space<vmem>>, %arg7: memref<8x128xf32, #tpu.memory_space<vmem>>) attributes {dimension_semantics = [], scalar_prefetch = 0 : i64, scratch_operands = 0 : i64, tpu.core_type = #tpu.core_type<tc>} {
    %c0 = arith.constant 0 : index
    %c0_0 = arith.constant 0 : index
    %0 = vector.load %arg0[%c0, %c0_0] : memref<8x64xf32, #tpu.memory_space<vmem>>, vector<8x64xf32>
    %c0_1 = arith.constant 0 : index
    %c0_2 = arith.constant 0 : index
    %1 = vector.load %arg1[%c0_1, %c0_2] : memref<64x128xf32, #tpu.memory_space<vmem>>, vector<64x128xf32>
    %c0_3 = arith.constant 0 : index
    %c0_4 = arith.constant 0 : index
    %2 = vector.load %arg2[%c0_3, %c0_4] : memref<1x128xf32, #tpu.memory_space<vmem>>, vector<1x128xf32>
    %cst = arith.constant dense<0.000000e+00> : vector<8x128xf32>
    %3 = tpu.matmul %0, %1, %cst {dimension_numbers = #tpu.dot_dimension_numbers<[1], [0], [0], [1], [0, 0, 1, 1], [], []>} : vector<8x64xf32>, vector<64x128xf32>, vector<8x128xf32> -> vector<8x128xf32>
    %4 = vector.broadcast %2 : vector<1x128xf32> to vector<8x128xf32>
    %5 = arith.addf %3, %4 : vector<8x128xf32>
    %cst_5 = arith.constant 0.000000e+00 : f32
    %6 = vector.broadcast %cst_5 : f32 to vector<8x128xf32>
    %7 = arith.maximumf %5, %6 : vector<8x128xf32>
    %c0_6 = arith.constant 0 : index
    %c0_7 = arith.constant 0 : index
    %8 = vector.load %arg3[%c0_6, %c0_7] : memref<128x128xf32, #tpu.memory_space<vmem>>, vector<128x128xf32>
    %c0_8 = arith.constant 0 : index
    %c0_9 = arith.constant 0 : index
    %9 = vector.load %arg4[%c0_8, %c0_9] : memref<1x128xf32, #tpu.memory_space<vmem>>, vector<1x128xf32>
    %cst_10 = arith.constant dense<0.000000e+00> : vector<8x128xf32>
    %10 = tpu.matmul %7, %8, %cst_10 {dimension_numbers = #tpu.dot_dimension_numbers<[1], [0], [0], [1], [0, 0, 1, 1], [], []>} : vector<8x128xf32>, vector<128x128xf32>, vector<8x128xf32> -> vector<8x128xf32>
    %11 = vector.broadcast %9 : vector<1x128xf32> to vector<8x128xf32>
    %12 = arith.addf %10, %11 : vector<8x128xf32>
    %cst_11 = arith.constant 0.000000e+00 : f32
    %13 = vector.broadcast %cst_11 : f32 to vector<8x128xf32>
    %14 = arith.maximumf %12, %13 : vector<8x128xf32>
    %c0_12 = arith.constant 0 : index
    %c0_13 = arith.constant 0 : index
    %15 = vector.load %arg5[%c0_12, %c0_13] : memref<128x128xf32, #tpu.memory_space<vmem>>, vector<128x128xf32>
    %c0_14 = arith.constant 0 : index
    %c0_15 = arith.constant 0 : index
    %16 = vector.load %arg6[%c0_14, %c0_15] : memref<1x128xf32, #tpu.memory_space<vmem>>, vector<1x128xf32>
    %cst_16 = arith.constant dense<0.000000e+00> : vector<8x128xf32>
    %17 = tpu.matmul %14, %15, %cst_16 {dimension_numbers = #tpu.dot_dimension_numbers<[1], [0], [0], [1], [0, 0, 1, 1], [], []>} : vector<8x128xf32>, vector<128x128xf32>, vector<8x128xf32> -> vector<8x128xf32>
    %18 = vector.broadcast %16 : vector<1x128xf32> to vector<8x128xf32>
    %19 = arith.addf %17, %18 : vector<8x128xf32>
    %c0_17 = arith.constant 0 : index
    %c0_18 = arith.constant 0 : index
    %20 = vector.load %arg7[%c0_17, %c0_18] : memref<8x128xf32, #tpu.memory_space<vmem>>, vector<8x128xf32>
    tpu.vector_store %arg7[%c0_17, %c0_18], %19 {strides = array<i32>} : memref<8x128xf32, #tpu.memory_space<vmem>>, vector<8x128xf32>,
    return
  }
}

</mosaic_0001>

<bundles_post_ra>
// kernel: perceptron_forward.1
= control target key start
LH: loop header
LB: loop body
LE: loop exit
PB: predicated region body
PF: predicated region fallthrough
CT: control target
= control target key end

     0   :  { %12 = vsyncpa [#allocation3], 0  ;;  %s810_s0 = inlined_call_operand.vmem [shape: f32[8,64], index: 0, kind: input, shape index: {}]   ;;  %s811_s1 = inlined_call_operand.hbm [shape: f32[64,128], index: 1, kind: input, shape index: {}]   ;;  %s812_s2 = inlined_call_operand.vmem [shape: f32[1,128], index: 2, kind: input, shape index: {}]   ;;  %s813_s3 = inlined_call_operand.hbm [shape: f32[128,128], index: 3, kind: input, shape index: {}]   ;;  %s814_s4 = inlined_call_operand.vmem [shape: f32[1,128], index: 4, kind: input, shape index: {}]   ;;  %s815_s5 = inlined_call_operand.hbm [shape: f32[128,128], index: 5, kind: input, shape index: {}]   ;;  %s816_s6 = inlined_call_operand.vmem [shape: f32[1,128], index: 6, kind: input, shape index: {}]   ;;  %s817_s7 = inlined_call_operand.hbm [shape: f32[8,128], index: 7, kind: output, shape index: {}]  }
   0x1   :  { %13 = vsyncpa [#allocation6], 0 }
   0x2   :  { %14 = vsyncpa [#allocation4], 0  ;;  %s662_s24 = smov [#allocation5]   ;;  %s663_s26 = smov [#allocation2]  }
   0x3   :  { %s36_s25 = sshll.u32 %s662_s24, 4  ;;  %s22_s27 = sshll.u32 %s663_s26, 4  ;;  %s37_s25 = int_to_ptr.vmem [resolvable:$true] %s36_s25  ;;  %s711_s27 = int_to_ptr.vmem [resolvable:$true] %s22_s27 }
   0x4   :  { %s568_s30 = scalar_lea.hbm %s813_s3, 2048 }
   0x5   :  { %p569_p0 = scmp.ne.s32.totalorder %s813_s3, %s568_s30  ;;  %p572_p1 = scmp.lt.u32.totalorder %s568_s30, %s813_s3 }
   0x7   :  { %p574_p2 = pnand %p572_p1, %p569_p0 }
   0x9   :  { %577 = shalt.err (!%p574_p2)
}
   0xa   :  { %s578_s12 = scalar_lea.vmem %s37_s25, 2048  ;;  %p583_p4 = scmp.lt.s32.totalorder %s37_s25, %s37_s25 }
   0xb   :  { %p579_p3 = scmp.ne.s32.totalorder %s37_s25, %s578_s12  ;;  %p584_p5 = scmp.lt.s32.totalorder %s578_s12, %s578_s12 }
   0xd   :  { %p585_p6 = por %p584_p5, %p583_p4 }
   0xf   :  { %p586_p7 = pnand %p585_p6, %p579_p3 }
  0x11   :  { %589 = shalt.err (!%p586_p7)
}
  0x12   :  { %s664_s13 = smov 128   ;;  %s665_s14 = smov 8  }
  0x13   :  { %42 = dma.hbm_to_vmem [thread:$0]  %s813_s3, 2048, %s37_s25, [#allocation6], %s664_s13, %s664_s13, %s665_s14  }
  0x14   :  { %s590_s19 = scalar_lea.hbm %s811_s1, 1024 }
  0x15   :  { %p591_p8 = scmp.ne.s32.totalorder %s811_s1, %s590_s19  ;;  %p594_p9 = scmp.lt.u32.totalorder %s590_s19, %s811_s1 }
  0x17   :  { %p596_p10 = pnand %p594_p9, %p591_p8 }
  0x19   :  { %599 = shalt.err (!%p596_p10)
}
  0x1a   :  { %s600_s24 = scalar_lea.vmem %s711_s27, 1024  ;;  %p605_p12 = scmp.lt.s32.totalorder %s711_s27, %s711_s27 }
  0x1b   :  { %p601_p11 = scmp.ne.s32.totalorder %s711_s27, %s600_s24  ;;  %p606_p13 = scmp.lt.s32.totalorder %s600_s24, %s600_s24 }
  0x1d   :  { %p607_p0 = por %p606_p13, %p605_p12 }
  0x1f   :  { %p608_p1 = pnand %p607_p0, %p601_p11 }
  0x21   :  { %611 = shalt.err (!%p608_p1)
}
  0x22   :  { %28 = dma.hbm_to_vmem [thread:$0]  %s811_s1, 1024, %s711_s27, [#allocation3], %s664_s13, %s664_s13, %s665_s14  }
  0x23   :  { %s666_s26 = smov [#allocation7]   ;;  %s612_s8 = scalar_lea.hbm %s815_s5, 2048 }
  0x24   :  { %s50_s28 = sshll.u32 %s666_s26, 4  ;;  %p613_p2 = scmp.ne.s32.totalorder %s815_s5, %s612_s8  ;;  %s51_s28 = int_to_ptr.vmem [resolvable:$true] %s50_s28 }
  0x25   :  { %p616_p3 = scmp.lt.u32.totalorder %s612_s8, %s815_s5 }
  0x27   :  { %p618_p4 = pnand %p616_p3, %p613_p2 }
  0x29   :  { %621 = shalt.err (!%p618_p4)
}
  0x2a   :  { %s622_s15 = scalar_lea.vmem %s51_s28, 2048  ;;  %p627_p6 = scmp.lt.s32.totalorder %s51_s28, %s51_s28 }
  0x2b   :  { %p623_p5 = scmp.ne.s32.totalorder %s51_s28, %s622_s15  ;;  %p628_p7 = scmp.lt.s32.totalorder %s622_s15, %s622_s15 }
  0x2d   :  { %p629_p8 = por %p628_p7, %p627_p6 }
  0x2f   :  { %p630_p9 = pnand %p629_p8, %p623_p5 }
  0x31   :  { %633 = shalt.err (!%p630_p9)
}
  0x32   :  { %56 = dma.hbm_to_vmem [thread:$0]  %s815_s5, 2048, %s51_s28, [#allocation6], %s664_s13, %s664_s13, %s665_s14  }
  0x33   :  { %656 = dma.done.wait [#allocation3], 1024  }
  0x34   :  { %657 = vsyncadd [#allocation3], 4294966272 }
  0x35   :  { %658 = dma.done.wait [#allocation6], 4096  }
  0x36   :  { %659 = vsyncadd [#allocation6], 4294963200  ;;  %v667_v0 = vmov 0.0|0.0   ;;  %vm668_vm0 = vmmov 0   ;;  %v669_v1 = vmov 0.0   ;;  %v69_v2 = vld [vmem:[#allocation2] sm:$0xff] }
  0x37   :  { %499 = vmatprep.subr.bf16.mxu0 %v667_v0  ;;  %426 = vmatprep.mubr.msk.f32.mxu0 %vm668_vm0, %v669_v1  ;;  %v70_v3 = vld [vmem:[#allocation2 + $0x8] sm:$0xff]  ;;  %v71_v4 = vld [vmem:[#allocation2 + $0x10] sm:$0xff]  ;;  %v72_v6 = vld [vmem:[#allocation2 + $0x18] sm:$0xff]  ;;  %vm84_vm1 = vcmask 523264   ;;  %s670_s19 = smov [#allocation8]  }
  0x38   :  { %511 = vmatprep.subr.bf16.mxu1 %v667_v0  ;;  %461 = vmatprep.mubr.msk.f32.mxu1 %vm668_vm0, %v669_v1  ;;  %v500_v5 = vpack.c.bf16 %v70_v3, %v69_v2  ;;  %v503_v7 = vpack.c.bf16 %v72_v6, %v71_v4  ;;  %v159_v8 = vld [vmem:[#allocation5] sm:$0xff]  ;;  %v160_v9 = vld [vmem:[#allocation5 + $0x8] sm:$0xff]  ;;  %v161_v10 = vld [vmem:[#allocation5 + $0x10] sm:$0xff]  ;;  %s353_s20 = sshll.u32 %s670_s19, 4  ;;  %s354_s20 = int_to_ptr.vmem [resolvable:$true] %s353_s20 }
  0x39   :  { %v73_v11 = vld [vmem:[#allocation2 + $0x20] sm:$0xff]  ;;  %v74_v12 = vld [vmem:[#allocation2 + $0x28] sm:$0xff]  ;;  %v512_v13 = vpack.c.bf16 %v160_v9, %v159_v8  ;;  %v162_v14 = vld [vmem:[#allocation5 + $0x18] sm:$0xff]  ;;  %s634_s21 = scalar_lea.vmem %s354_s20, 128  ;;  %p639_p11 = scmp.lt.s32.totalorder %s354_s20, %s354_s20 }
  0x3a   :  { %501 = vmatpush3.bf16.msra.mxu0 %v500_v5  ;;  %v515_v15 = vpack.c.bf16 %v162_v14, %v161_v10  ;;  %v506_v16 = vpack.c.bf16 %v74_v12, %v73_v11  ;;  %v163_v17 = vld [vmem:[#allocation5 + $0x20] sm:$0xff]  ;;  %v164_v18 = vld [vmem:[#allocation5 + $0x28] sm:$0xff]  ;;  %v75_v19 = vld [vmem:[#allocation2 + $0x30] sm:$0xff]  ;;  %p635_p10 = scmp.ne.s32.totalorder %s354_s20, %s634_s21  ;;  %p640_p12 = scmp.lt.s32.totalorder %s634_s21, %s634_s21 }
  0x3b   :  { %502 = vmatprep.subr.bf16.mxu0 %v667_v0  ;;  %513 = vmatpush3.bf16.msra.mxu1 %v512_v13  ;;  %v76_v20 = vld [vmem:[#allocation2 + $0x38] sm:$0xff]  ;;  %v518_v21 = vpack.c.bf16 %v164_v18, %v163_v17  ;;  %v165_v23 = vld [vmem:[#allocation5 + $0x30] sm:$0xff]  ;;  %v68_v26 = vld [vmem:[%s810_s0] sm:$0xff] }
  0x3c   :  { %514 = vmatprep.subr.bf16.mxu1 %v667_v0  ;;  %v509_v22 = vpack.c.bf16 %v76_v20, %v75_v19  ;;  %v166_v24 = vld [vmem:[#allocation5 + $0x38] sm:$0xff]  ;;  %v167_v27 = vld [vmem:[#allocation5 + $0x40] sm:$0xff]  ;;  %v168_v28 = vld [vmem:[#allocation5 + $0x48] sm:$0xff]  ;;  %p641_p13 = por %p640_p12, %p639_p11 }
  0x3d   :  { %v521_v25 = vpack.c.bf16 %v166_v24, %v165_v23  ;;  %v524_v29 = vpack.c.bf16 %v168_v28, %v167_v27  ;;  %v169_v30 = vld [vmem:[#allocation5 + $0x50] sm:$0xff]  ;;  %v170_v31 = vld [vmem:[#allocation5 + $0x58] sm:$0xff]  ;;  %v171_v33 = vld [vmem:[#allocation5 + $0x60] sm:$0xff] }
  0x3e   :  { %504 = vmatpush3.bf16.msra.mxu0 %v503_v7  ;;  %v527_v32 = vpack.c.bf16 %v170_v31, %v169_v30  ;;  %v172_v34 = vld [vmem:[#allocation5 + $0x68] sm:$0xff]  ;;  %v173_v36 = vld [vmem:[#allocation5 + $0x70] sm:$0xff]  ;;  %v174_v37 = vld [vmem:[#allocation5 + $0x78] sm:$0xff]  ;;  %p642_p0 = pnand %p641_p13, %p635_p10 }
  0x3f   :  { %505 = vmatprep.subr.bf16.mxu0 %v667_v0  ;;  %516 = vmatpush3.bf16.msra.mxu1 %v515_v15  ;;  %v530_v35 = vpack.c.bf16 %v172_v34, %v171_v33  ;;  %v533_v38 = vpack.c.bf16 %v174_v37, %v173_v36  ;;  %v253_v39 = vld [vmem:[#allocation7] sm:$0xff]  ;;  %v254_v40 = vld [vmem:[#allocation7 + $0x8] sm:$0xff]  ;;  %v255_v41 = vld [vmem:[#allocation7 + $0x10] sm:$0xff] }
  0x40   :  { %517 = vmatprep.subr.bf16.mxu1 %v667_v0  ;;  %v536_v42 = vpack.c.bf16 %v254_v40, %v253_v39  ;;  %v256_v43 = vld [vmem:[#allocation7 + $0x18] sm:$0xff]  ;;  %v257_v45 = vld [vmem:[#allocation7 + $0x20] sm:$0xff]  ;;  %v258_v46 = vld [vmem:[#allocation7 + $0x28] sm:$0xff] }
  0x41   :  { %v539_v44 = vpack.c.bf16 %v256_v43, %v255_v41  ;;  %v542_v47 = vpack.c.bf16 %v258_v46, %v257_v45  ;;  %v259_v48 = vld [vmem:[#allocation7 + $0x30] sm:$0xff]  ;;  %v260_v49 = vld [vmem:[#allocation7 + $0x38] sm:$0xff]  ;;  %v261_v51 = vld [vmem:[#allocation7 + $0x40] sm:$0xff] }
  0x42   :  { %507 = vmatpush3.bf16.msra.mxu0 %v506_v16  ;;  %v545_v50 = vpack.c.bf16 %v260_v49, %v259_v48  ;;  %v262_v52 = vld [vmem:[#allocation7 + $0x48] sm:$0xff]  ;;  %v263_v54 = vld [vmem:[#allocation7 + $0x50] sm:$0xff]  ;;  %v264_v55 = vld [vmem:[#allocation7 + $0x58] sm:$0xff] }
  0x43   :  { %508 = vmatprep.subr.bf16.mxu0 %v667_v0  ;;  %519 = vmatpush3.bf16.msra.mxu1 %v518_v21  ;;  %v548_v53 = vpack.c.bf16 %v262_v52, %v261_v51  ;;  %v551_v56 = vpack.c.bf16 %v264_v55, %v263_v54  ;;  %v265_v57 = vld [vmem:[#allocation7 + $0x60] sm:$0xff]  ;;  %v266_v58 = vld [vmem:[#allocation7 + $0x68] sm:$0xff]  ;;  %v267_v2 = vld [vmem:[#allocation7 + $0x70] sm:$0xff] }
  0x44   :  { %520 = vmatprep.subr.bf16.mxu1 %v667_v0  ;;  %v554_v59 = vpack.c.bf16 %v266_v58, %v265_v57  ;;  %v363_v60 = vld [vmem:[%s812_s2] ss:$0 sm:$0xff]  ;;  %v268_v3 = vld [vmem:[#allocation7 + $0x78] sm:$0xff] }
  0x45   :  { %v557_v4 = vpack.c.bf16 %v268_v3, %v267_v2  ;;  %v365_v5 = vld [vmem:[%s814_s4] ss:$0 sm:$0xff] }
  0x46   :  { %510 = vmatpush3.bf16.msra.mxu0 %v509_v22  ;;  %v366_v9 = vld [vmem:[%s816_s6] ss:$0 sm:$0xff] }
  0x47   :  { %535 = vmatprep.subr.bf16.mxu0 %v667_v0  ;;  %522 = vmatpush3.bf16.msra.mxu1 %v521_v25 }
  0x48   :  { %523 = vmatprep.subr.bf16.mxu1 %v667_v0 }
  0x49   :  { %427 = vmatmul.mubr.msk.f32.vlgmr.msra.gmra.mrb[0].mxu0 %vm84_vm1, %v68_v26 }
  0x4a   :  { %496 = vmatprep.mubr.msk.f32.mxu0 %vm668_vm0, %v669_v1  ;;  %537 = vmatpush3.bf16.msra.mxu0 %v536_v42 }
  0x4b   :  { %525 = vmatpush3.bf16.msra.mxu1 %v524_v29  ;;  %538 = vmatprep.subr.bf16.mxu0 %v667_v0 }
  0x4c   :  { %526 = vmatprep.subr.bf16.mxu1 %v667_v0 }
  0x4e   :  { %540 = vmatpush3.bf16.msra.mxu0 %v539_v44 }
  0x4f   :  { %528 = vmatpush3.bf16.msra.mxu1 %v527_v32  ;;  %541 = vmatprep.subr.bf16.mxu0 %v667_v0 }
  0x50   :  { %529 = vmatprep.subr.bf16.mxu1 %v667_v0 }
  0x52   :  { %543 = vmatpush3.bf16.msra.mxu0 %v542_v47 }
  0x53   :  { %531 = vmatpush3.bf16.msra.mxu1 %v530_v35  ;;  %544 = vmatprep.subr.bf16.mxu0 %v667_v0 }
  0x54   :  { %532 = vmatprep.subr.bf16.mxu1 %v667_v0 }
  0x56   :  { %546 = vmatpush3.bf16.msra.mxu0 %v545_v50 }
  0x57   :  { %534 = vmatpush3.bf16.msra.mxu1 %v533_v38  ;;  %547 = vmatprep.subr.bf16.mxu0 %v667_v0 }
  0x5a   :  { %549 = vmatpush3.bf16.msra.mxu0 %v548_v53 }
  0x5b   :  { %550 = vmatprep.subr.bf16.mxu0 %v667_v0 }
  0x5e   :  { %552 = vmatpush3.bf16.msra.mxu0 %v551_v56 }
  0x5f   :  { %553 = vmatprep.subr.bf16.mxu0 %v667_v0 }
  0x62   :  { %555 = vmatpush3.bf16.msra.mxu0 %v554_v59 }
  0x63   :  { %556 = vmatprep.subr.bf16.mxu0 %v667_v0 }
  0x66   :  { %558 = vmatpush3.bf16.msra.mxu0 %v557_v4 }
 0x11c   :  { %v154_v61 = vpop.f32.mrb[0].mxu0 }
 0x11d   :  { %v155_v62 = vadd.f32 %v363_v60, %v154_v61  ;;  %v428_v63 = vpop.f32.mrb[1].mxu0 }
 0x11f   :  { %v158_v1 = vmax.f32 %v155_v62, 0.0 }
 0x121   :  { %462 = vmatmul.mubr.f32.vlgmr.msra.gmra.mrb[0].mxu1 %v158_v1 }
 0x1f4   :  { %v248_v6 = vpop.f32.mrb[0].mxu1 }
 0x1f5   :  { %v249_v7 = vadd.f32 %v365_v5, %v248_v6  ;;  %v463_v0 = vpop.f32.mrb[1].mxu1 }
 0x1f7   :  { %v252_v8 = vmax.f32 %v249_v7, 0.0 }
 0x1f9   :  { %497 = vmatmul.mubr.f32.vlgmr.msra.gmra.mrb[2].mxu0 %v252_v8 }
 0x2cc   :  { %v342_v10 = vpop.f32.mrb[2].mxu0 }
 0x2cd   :  { %v343_v11 = vadd.f32 %v366_v9, %v342_v10  ;;  %v498_v12 = vpop.f32.mrb[3].mxu0 }
 0x2cf   :  { %346 = vst [vmem:[#allocation8] sm:$0xff] %v343_v11 }
 0x2d0   :  { %645 = shalt.err (!%p642_p0)
}
 0x2d1   :  { %s646_s23 = scalar_lea.hbm %s817_s7, 128 }
 0x2d2   :  { %p647_p1 = scmp.ne.s32.totalorder %s817_s7, %s646_s23  ;;  %p650_p2 = scmp.lt.u32.totalorder %s646_s23, %s817_s7 }
 0x2d4   :  { %p652_p3 = pnand %p650_p2, %p647_p1 }
 0x2d6   :  { %655 = shalt.err (!%p652_p3)
}
 0x2d7   :  { %356 = dma.vmem_to_hbm [thread:$0]  %s354_s20, 128, %s817_s7, [#allocation4]  }
 0x2d8   :  { %660 = dma.done.wait [#allocation4], 128  }
 0x2d9   :  { %661 = vsyncadd [#allocation4], 4294967168 }
 0x2da   :  { %360 = vsyncpa [#allocation3], 1 }
 0x2db   :  { %361 = vsyncpa [#allocation6], 1 }
 0x2dc   :  { %362 = vsyncpa [#allocation4], 1 }

</bundles_post_ra>
